<compile_context>
chip_gen: v6e
topology: v6e:2x2x1
jax: 0.10.0
libtpu: 0.0.40
codegen_flags: <defaults>
</compile_context>

<pallas_src>
import functools

import jax
import jax.numpy as jnp
from jax import lax
from jax.experimental import pallas as pl
from jax.experimental.pallas import tpu as pltpu

LANE = 128
ACC_ROWS = 8            # sublane height of the per-class accumulator slabs
SMOOTH = 1e-05


def _cdiv(a, b):
    return -(-a // b)


def _round_down(x, m):
    return (x // m) * m


def _vmem_capacity_bytes():
    """Best-effort physical VMEM query; conservative (v7x) fallback."""
    try:
        info = pltpu.get_tpu_info()
        for name in ("vmem_capacity_bytes", "vmem_size_bytes", "vmem_bytes"):
            cap = getattr(info, name, None)
            if cap:
                return int(cap)
    except Exception:
        pass
    return 64 * 1024 * 1024


def _tile_budget(n_classes, itemsize):
    """Generation-aware (rows_cap, vmem_limit_bytes)."""
    cap = _vmem_capacity_bytes()
    if cap >= 96 * 1024 * 1024:          # v5e / v6e: 128 MiB VMEM
        target_block = 6 * 1024 * 1024
        vmem_limit = 64 * 1024 * 1024
        max_rows = 4096
    else:                                # v7x: 64 MiB VMEM
        target_block = 4 * 1024 * 1024
        vmem_limit = 40 * 1024 * 1024
        max_rows = 2048
    rows = max(ACC_ROWS, target_block // (n_classes * LANE * itemsize))
    return min(rows, max_rows), vmem_limit


def _fold(x, rows):
    """(rows, 128) f32 -> (8, 128) partial sums with pure vreg adds."""
    return jnp.sum(x.reshape(rows // ACC_ROWS, ACC_ROWS, LANE), axis=0)


def _dice_kernel(score_ref, label_ref, out_ref, *, n_classes, chunk_rows,
                 tiles_per_split, valid_rows, valid_elems, mask_elems,
                 fuse_softmax):
    """score_ref: (1, C, tile_rows, 128) scores/logits (native dtype).
    label_ref: (1, 1, tile_rows, 128) class labels (native dtype).
    out_ref:   (1, 3, C, 8, 128) f32 resident accumulators:
               [0]=intersect, [1]=y_sum, [2]=z_sum per class."""
    split = pl.program_id(0)
    n = pl.program_id(2)                    # spatial tile index (reduction axis)
    tile_rows = score_ref.shape[2]
    n_chunks = tile_rows // chunk_rows

    @pl.when(n == 0)
    def _():
        out_ref[...] = jnp.zeros(out_ref.shape, out_ref.dtype)

    # Logical (unclamped) tile position -> masking; the index_map clamps the
    # actual DMA so phantom tiles just re-read (and fully mask) the last tile.
    base_row = (split * tiles_per_split + n) * tile_rows

    row_iota = lax.broadcasted_iota(jnp.int32, (chunk_rows, LANE), 0)
    if mask_elems:
        lane_iota = lax.broadcasted_iota(jnp.int32, (chunk_rows, LANE), 1)
        elem_iota = row_iota * LANE + lane_iota

    def chunk(c, accs):
        accs = list(accs)
        r0 = pl.multiple_of(c * chunk_rows, 8)

        # Validity mask for this chunk (kills partial-block garbage, padded
        # rows, and — in elem mode — the lane tail).  jnp.where selects, so
        # NaN/Inf garbage never propagates into the accumulators.
        if mask_elems:
            vmask = (elem_iota + (base_row + c * chunk_rows) * LANE) < valid_elems
        else:
            vmask = row_iota < (valid_rows - base_row - c * chunk_rows)
        vmask_f = vmask.astype(jnp.float32)

        lab = label_ref[0, 0, pl.ds(r0, chunk_rows), :]

        if fuse_softmax:
            raw = [score_ref[0, i, pl.ds(r0, chunk_rows), :].astype(jnp.float32)
                   for i in range(n_classes)]
            m = raw[0]
            for i in range(1, n_classes):
                m = jnp.maximum(m, raw[i])
            exps = [jnp.exp(x - m) for x in raw]            # EUP
            denom = exps[0]
            for i in range(1, n_classes):
                denom = denom + exps[i]
            inv = 1.0 / denom                               # exact (accuracy)
            probs = [e * inv for e in exps]

        for i in range(n_classes):
            if fuse_softmax:
                p = probs[i]
            else:
                p = score_ref[0, i, pl.ds(r0, chunk_rows), :].astype(jnp.float32)
            eq = lab == jnp.asarray(i, lab.dtype)           # native-dtype compare
            pm = jnp.where(vmask, p, 0.0)
            inter = jnp.where(eq, pm, 0.0)
            y = jnp.where(eq, vmask_f, 0.0)
            accs[3 * i + 0] = accs[3 * i + 0] + _fold(inter, chunk_rows)
            accs[3 * i + 1] = accs[3 * i + 1] + _fold(y, chunk_rows)
            accs[3 * i + 2] = accs[3 * i + 2] + _fold(pm * pm, chunk_rows)
        return tuple(accs)

    zero = jnp.zeros((ACC_ROWS, LANE), jnp.float32)
    accs = lax.fori_loop(0, n_chunks, chunk,
                         tuple(zero for _ in range(3 * n_classes)),
                         unroll=min(2, n_chunks))

    # One read-modify-write of the tiny resident output block per grid step.
    for i in range(n_classes):
        out_ref[0, 0, i] += accs[3 * i + 0]
        out_ref[0, 1, i] += accs[3 * i + 1]
        out_ref[0, 2, i] += accs[3 * i + 2]


@functools.partial(jax.jit, static_argnames=("n_classes", "softmax"))
def dice_loss(inputs, target, n_classes, weight=None, softmax=False):
    """Matches DiceLoss.forward: sum_i weight[i] * dice_i / n_classes."""
    B, C, H, W = inputs.shape
    assert C == n_classes, "predict & target shape do not match"

    if weight is None:
        weight = jnp.ones((n_classes,), jnp.float32)
    else:
        weight = jnp.asarray(weight, jnp.float32)

    hw = H * W
    scores = inputs.reshape(B, C, hw)                 # native dtype, no copy
    labels = target.reshape(B, 1, hw)                 # native dtype, no cast
    if labels.dtype == jnp.bool_:
        labels = labels.astype(jnp.int32)

    sc_item = jnp.dtype(scores.dtype).itemsize
    lab_item = jnp.dtype(labels.dtype).itemsize
    sub = {1: 32, 2: 16, 4: 8}
    align = max(sub.get(sc_item, 8), sub.get(lab_item, 8))

    n_rows_data = _cdiv(hw, LANE)                     # rows holding real data
    n_rows = max(n_rows_data, align)
    hw_padded = n_rows * LANE
    if hw_padded != hw:
        # Rare fallback (lane tail or tiny input): one pad copy; pad scores
        # with 0 and labels with n_classes (never matches a class).
        pad = hw_padded - hw
        scores = jnp.pad(scores, ((0, 0), (0, 0), (0, pad)))
        labels = jnp.pad(labels, ((0, 0), (0, 0), (0, pad)),
                         constant_values=n_classes)
    scores = scores.reshape(B, C, n_rows, LANE)
    labels = labels.reshape(B, 1, n_rows, LANE)

    # --- tiling (generation-aware) -------------------------------------
    cap_rows, vmem_limit = _tile_budget(C, sc_item)
    chunk_base = 32 if softmax else 64                # register pressure
    tile_rows = max(_round_down(min(cap_rows, n_rows), align), align)
    chunk_rows = min(chunk_base, tile_rows)
    tile_rows = max(chunk_rows, _round_down(tile_rows, chunk_rows))
    n_tiles = _cdiv(n_rows, tile_rows)

    # Megacore fallback: for odd B split the spatial tiles across a leading
    # parallel axis so both v7x TensorCores get work even at B=1.
    nsplit = 2 if (B % 2 == 1 and n_tiles >= 2) else 1
    tiles_per_split = _cdiv(n_tiles, nsplit)

    mask_elems = (hw % LANE) != 0

    kernel = functools.partial(
        _dice_kernel,
        n_classes=C, chunk_rows=chunk_rows, tiles_per_split=tiles_per_split,
        valid_rows=n_rows_data, valid_elems=hw, mask_elems=mask_elems,
        fuse_softmax=softmax)

    def _tile_index(s, n):
        # Clamp so phantom tiles (odd n_tiles with nsplit=2) never DMA past
        # the array; the kernel fully masks them via the logical position.
        return jnp.minimum(s * tiles_per_split + n, n_tiles - 1)

    score_spec = pl.BlockSpec((1, C, tile_rows, LANE),
                              lambda s, b, n: (b, 0, _tile_index(s, n), 0))
    label_spec = pl.BlockSpec((1, 1, tile_rows, LANE),
                              lambda s, b, n: (b, 0, _tile_index(s, n), 0))
    out_spec = pl.BlockSpec((1, 3, C, ACC_ROWS, LANE),
                            lambda s, b, n: (s * B + b, 0, 0, 0, 0))

    partial_sums = pl.pallas_call(
        kernel,
        out_shape=jax.ShapeDtypeStruct((nsplit * B, 3, C, ACC_ROWS, LANE),
                                       jnp.float32),
        grid_spec=pltpu.PrefetchScalarGridSpec(
            num_scalar_prefetch=0,
            grid=(nsplit, B, tiles_per_split),
            in_specs=[score_spec, label_spec],
            out_specs=out_spec,
        ),
        compiler_params=pltpu.CompilerParams(
            dimension_semantics=("parallel", "parallel", "arbitrary"),
            vmem_limit_bytes=vmem_limit,
        ),
    )(scores, labels)

    # Tiny glue: finish the reduction + dice formula.
    sums = jnp.sum(partial_sums, axis=(0, 3, 4))      # (3, C)
    intersect, y_sum, z_sum = sums[0], sums[1], sums[2]
    dice = 1.0 - (2.0 * intersect + SMOOTH) / (z_sum + y_sum + SMOOTH)
    return jnp.sum(dice * weight) / n_classes


def _dice_loss_ref(inputs, target, n_classes, weight=None, softmax=False):
    """Pure-JAX reference mirroring the PyTorch module."""
    if softmax:
        inputs = jax.nn.softmax(inputs.astype(jnp.float32), axis=1)
    if weight is None:
        weight = [1.0] * n_classes
    labels = target.reshape(target.shape[0], -1).astype(jnp.float32)
    loss = 0.0
    for i in range(n_classes):
        score = inputs[:, i].reshape(inputs.shape[0], -1).astype(jnp.float32)
        t = (labels == float(i)).astype(jnp.float32)
        intersect = jnp.sum(score * t)
        y_sum = jnp.sum(t * t)
        z_sum = jnp.sum(score * score)
        dice = 1.0 - (2.0 * intersect + SMOOTH) / (z_sum + y_sum + SMOOTH)
        loss = loss + dice * weight[i]
    return loss / n_classes


if __name__ == "__main__":
    key = jax.random.PRNGKey(0)
    k1, k2, k3, k4 = jax.random.split(key, 4)

    # Primary check: probabilities path (softmax applied upstream).
    B, C, H, W = 2, 4, 16, 16
    logits = jax.random.normal(k1, (B, C, H, W), jnp.float32)
    probs = jax.nn.softmax(logits, axis=1)
    target = jax.random.randint(k2, (B, 1, H, W), 0, C, jnp.int32)

    out = jax.block_until_ready(dice_loss(probs, target, n_classes=C, softmax=False))
    ref = _dice_loss_ref(probs, target, n_classes=C, softmax=False)
    assert jnp.allclose(out, ref, rtol=1e-4, atol=1e-5), (out, ref)

    # Fused-softmax path (logits in, softmax computed inside the kernel).
    out_sm = jax.block_until_ready(dice_loss(logits, target, n_classes=C, softmax=True))
    ref_sm = _dice_loss_ref(logits, target, n_classes=C, softmax=True)
    assert jnp.allclose(out_sm, ref_sm, rtol=1e-4, atol=1e-5), (out_sm, ref_sm)

    # Odd batch: exercises the megacore split axis + partial-tile masking.
    B2, C2, H2, W2 = 1, 2, 96, 96
    logits2 = jax.random.normal(k3, (B2, C2, H2, W2), jnp.float32)
    probs2 = jax.nn.softmax(logits2, axis=1)
    target2 = jax.random.randint(k4, (B2, 1, H2, W2), 0, C2, jnp.int32)
    out2 = jax.block_until_ready(dice_loss(probs2, target2, n_classes=C2, softmax=False))
    ref2 = _dice_loss_ref(probs2, target2, n_classes=C2, softmax=False)
    assert jnp.allclose(out2, ref2, rtol=1e-4, atol=1e-5), (out2, ref2)

    # TODO(synk): the PyTorch module's `class_wise_dice` bookkeeping uses
    # `.item()` (host sync) and is not part of the returned loss; not ported.
    print("KERNEL_OK")
</pallas_src>

<mosaic_0001>
module attributes {stable_mosaic.version = 11 : i64} {
  func.func @_dice_kernel(%arg0: i32, %arg1: i32, %arg2: i32, %arg3: memref<1x4x8x128xf32, #tpu.memory_space<vmem>>, %arg4: memref<1x1x8x128xi32, #tpu.memory_space<vmem>>, %arg5: memref<1x3x4x8x128xf32, #tpu.memory_space<vmem>>) attributes {dimension_semantics = [#tpu.dimension_semantics<parallel>, #tpu.dimension_semantics<parallel>, #tpu.dimension_semantics<arbitrary>], iteration_bounds = array<i64: 1, 2, 1>, scalar_prefetch = 0 : i64, scratch_operands = 0 : i64, tpu.core_type = #tpu.core_type<tc>, window_params = [{transform_indices = @transform_0, window_bounds = array<i64: 1, 4, 8, 128>}, {transform_indices = @transform_1, window_bounds = array<i64: 1, 1, 8, 128>}, {transform_indices = @transform_2, window_bounds = array<i64: 1, 3, 4, 8, 128>}]} {
    %c0_i32 = arith.constant 0 : i32
    %0 = arith.cmpi eq, %arg2, %c0_i32 : i32
    %1 = arith.extui %0 : i1 to i32
    %c0_i32_0 = arith.constant 0 : i32
    %2 = arith.cmpi ne, %1, %c0_i32_0 : i32
    scf.if %2 {
      %cst_163 = arith.constant 0.000000e+00 : f32
      %176 = vector.broadcast %cst_163 : f32 to vector<1x3x4x8x128xf32>
      %c0_164 = arith.constant 0 : index
      %c0_165 = arith.constant 0 : index
      %c0_166 = arith.constant 0 : index
      %c0_167 = arith.constant 0 : index
      %c0_168 = arith.constant 0 : index
      %177 = vector.load %arg5[%c0_164, %c0_165, %c0_166, %c0_167, %c0_168] : memref<1x3x4x8x128xf32, #tpu.memory_space<vmem>>, vector<1x3x4x8x128xf32>
      tpu.vector_store %arg5[%c0_164, %c0_165, %c0_166, %c0_167, %c0_168], %176 {strides = array<i32>} : memref<1x3x4x8x128xf32, #tpu.memory_space<vmem>>, vector<1x3x4x8x128xf32>,
    } else {
    }
    %c1_i32 = arith.constant 1 : i32
    %3 = arith.muli %arg0, %c1_i32 : i32
    %4 = arith.addi %3, %arg2 : i32
    %c8_i32 = arith.constant 8 : i32
    %5 = arith.muli %4, %c8_i32 : i32
    %6 = tpu.iota {dimensions = array<i32: 0>} : vector<8x128xi32>
    %cst = arith.constant 0.000000e+00 : f32
    %7 = vector.broadcast %cst : f32 to vector<8x128xf32>
    %c0_i32_1 = arith.constant 0 : i32
    %c8_i32_2 = arith.constant 8 : i32
    %8 = arith.muli %c0_i32_1, %c8_i32_2 : i32
    %9 = tpu.assume_multiple %8, 8 : i32
    %c2_i32 = arith.constant 2 : i32
    %10 = arith.subi %c2_i32, %5 : i32
    %c8_i32_3 = arith.constant 8 : i32
    %11 = arith.muli %c0_i32_1, %c8_i32_3 : i32
    %12 = arith.subi %10, %11 : i32
    %13 = vector.broadcast %12 : i32 to vector<8x128xi32>
    %14 = arith.cmpi slt, %6, %13 : vector<8x128xi32>
    %15 = arith.extui %14 : vector<8x128xi1> to vector<8x128xi32>
    %16 = arith.sitofp %15 : vector<8x128xi32> to vector<8x128xf32>
    %c0 = arith.constant 0 : index
    %c0_4 = arith.constant 0 : index
    %17 = arith.index_cast %9 : i32 to index
    %c0_5 = arith.constant 0 : index
    %18 = vector.load %arg4[%c0, %c0_4, %17, %c0_5] : memref<1x1x8x128xi32, #tpu.memory_space<vmem>>, vector<1x1x8x128xi32>
    %19 = vector.shape_cast %18 : vector<1x1x8x128xi32> to vector<8x128xi32>
    %c0_6 = arith.constant 0 : index
    %c0_7 = arith.constant 0 : index
    %20 = arith.index_cast %9 : i32 to index
    %c0_8 = arith.constant 0 : index
    %21 = vector.load %arg3[%c0_6, %c0_7, %20, %c0_8] : memref<1x4x8x128xf32, #tpu.memory_space<vmem>>, vector<1x1x8x128xf32>
    %22 = vector.shape_cast %21 : vector<1x1x8x128xf32> to vector<8x128xf32>
    %c0_i32_9 = arith.constant 0 : i32
    %23 = vector.broadcast %c0_i32_9 : i32 to vector<8x128xi32>
    %24 = arith.cmpi eq, %19, %23 : vector<8x128xi32>
    %cst_10 = arith.constant 0.000000e+00 : f32
    %25 = vector.broadcast %cst_10 : f32 to vector<8x128xf32>
    %26 = arith.select %14, %22, %25 : vector<8x128xi1>, vector<8x128xf32>
    %cst_11 = arith.constant 0.000000e+00 : f32
    %27 = vector.broadcast %cst_11 : f32 to vector<8x128xf32>
    %28 = arith.select %24, %26, %27 : vector<8x128xi1>, vector<8x128xf32>
    %cst_12 = arith.constant 0.000000e+00 : f32
    %29 = vector.broadcast %cst_12 : f32 to vector<8x128xf32>
    %30 = arith.select %24, %16, %29 : vector<8x128xi1>, vector<8x128xf32>
    %31 = vector.shape_cast %28 : vector<8x128xf32> to vector<1x8x128xf32>
    %cst_13 = arith.constant dense<0.000000e+00> : vector<8x128xf32>
    %32 = vector.multi_reduction <add>, %31, %cst_13 [0] : vector<1x8x128xf32> to vector<8x128xf32>
    %33 = arith.addf %7, %32 : vector<8x128xf32>
    %34 = vector.shape_cast %30 : vector<8x128xf32> to vector<1x8x128xf32>
    %cst_14 = arith.constant dense<0.000000e+00> : vector<8x128xf32>
    %35 = vector.multi_reduction <add>, %34, %cst_14 [0] : vector<1x8x128xf32> to vector<8x128xf32>
    %36 = arith.addf %7, %35 : vector<8x128xf32>
    %37 = arith.mulf %26, %26 : vector<8x128xf32>
    %38 = vector.shape_cast %37 : vector<8x128xf32> to vector<1x8x128xf32>
    %cst_15 = arith.constant dense<0.000000e+00> : vector<8x128xf32>
    %39 = vector.multi_reduction <add>, %38, %cst_15 [0] : vector<1x8x128xf32> to vector<8x128xf32>
    %40 = arith.addf %7, %39 : vector<8x128xf32>
    %c0_16 = arith.constant 0 : index
    %c1 = arith.constant 1 : index
    %41 = arith.index_cast %9 : i32 to index
    %c0_17 = arith.constant 0 : index
    %42 = vector.load %arg3[%c0_16, %c1, %41, %c0_17] : memref<1x4x8x128xf32, #tpu.memory_space<vmem>>, vector<1x1x8x128xf32>
    %43 = vector.shape_cast %42 : vector<1x1x8x128xf32> to vector<8x128xf32>
    %c1_i32_18 = arith.constant 1 : i32
    %44 = vector.broadcast %c1_i32_18 : i32 to vector<8x128xi32>
    %45 = arith.cmpi eq, %19, %44 : vector<8x128xi32>
    %cst_19 = arith.constant 0.000000e+00 : f32
    %46 = vector.broadcast %cst_19 : f32 to vector<8x128xf32>
    %47 = arith.select %14, %43, %46 : vector<8x128xi1>, vector<8x128xf32>
    %cst_20 = arith.constant 0.000000e+00 : f32
    %48 = vector.broadcast %cst_20 : f32 to vector<8x128xf32>
    %49 = arith.select %45, %47, %48 : vector<8x128xi1>, vector<8x128xf32>
    %cst_21 = arith.constant 0.000000e+00 : f32
    %50 = vector.broadcast %cst_21 : f32 to vector<8x128xf32>
    %51 = arith.select %45, %16, %50 : vector<8x128xi1>, vector<8x128xf32>
    %52 = vector.shape_cast %49 : vector<8x128xf32> to vector<1x8x128xf32>
    %cst_22 = arith.constant dense<0.000000e+00> : vector<8x128xf32>
    %53 = vector.multi_reduction <add>, %52, %cst_22 [0] : vector<1x8x128xf32> to vector<8x128xf32>
    %54 = arith.addf %7, %53 : vector<8x128xf32>
    %55 = vector.shape_cast %51 : vector<8x128xf32> to vector<1x8x128xf32>
    %cst_23 = arith.constant dense<0.000000e+00> : vector<8x128xf32>
    %56 = vector.multi_reduction <add>, %55, %cst_23 [0] : vector<1x8x128xf32> to vector<8x128xf32>
    %57 = arith.addf %7, %56 : vector<8x128xf32>
    %58 = arith.mulf %47, %47 : vector<8x128xf32>
    %59 = vector.shape_cast %58 : vector<8x128xf32> to vector<1x8x128xf32>
    %cst_24 = arith.constant dense<0.000000e+00> : vector<8x128xf32>
    %60 = vector.multi_reduction <add>, %59, %cst_24 [0] : vector<1x8x128xf32> to vector<8x128xf32>
    %61 = arith.addf %7, %60 : vector<8x128xf32>
    %c0_25 = arith.constant 0 : index
    %c2 = arith.constant 2 : index
    %62 = arith.index_cast %9 : i32 to index
    %c0_26 = arith.constant 0 : index
    %63 = vector.load %arg3[%c0_25, %c2, %62, %c0_26] : memref<1x4x8x128xf32, #tpu.memory_space<vmem>>, vector<1x1x8x128xf32>
    %64 = vector.shape_cast %63 : vector<1x1x8x128xf32> to vector<8x128xf32>
    %c2_i32_27 = arith.constant 2 : i32
    %65 = vector.broadcast %c2_i32_27 : i32 to vector<8x128xi32>
    %66 = arith.cmpi eq, %19, %65 : vector<8x128xi32>
    %cst_28 = arith.constant 0.000000e+00 : f32
    %67 = vector.broadcast %cst_28 : f32 to vector<8x128xf32>
    %68 = arith.select %14, %64, %67 : vector<8x128xi1>, vector<8x128xf32>
    %cst_29 = arith.constant 0.000000e+00 : f32
    %69 = vector.broadcast %cst_29 : f32 to vector<8x128xf32>
    %70 = arith.select %66, %68, %69 : vector<8x128xi1>, vector<8x128xf32>
    %cst_30 = arith.constant 0.000000e+00 : f32
    %71 = vector.broadcast %cst_30 : f32 to vector<8x128xf32>
    %72 = arith.select %66, %16, %71 : vector<8x128xi1>, vector<8x128xf32>
    %73 = vector.shape_cast %70 : vector<8x128xf32> to vector<1x8x128xf32>
    %cst_31 = arith.constant dense<0.000000e+00> : vector<8x128xf32>
    %74 = vector.multi_reduction <add>, %73, %cst_31 [0] : vector<1x8x128xf32> to vector<8x128xf32>
    %75 = arith.addf %7, %74 : vector<8x128xf32>
    %76 = vector.shape_cast %72 : vector<8x128xf32> to vector<1x8x128xf32>
    %cst_32 = arith.constant dense<0.000000e+00> : vector<8x128xf32>
    %77 = vector.multi_reduction <add>, %76, %cst_32 [0] : vector<1x8x128xf32> to vector<8x128xf32>
    %78 = arith.addf %7, %77 : vector<8x128xf32>
    %79 = arith.mulf %68, %68 : vector<8x128xf32>
    %80 = vector.shape_cast %79 : vector<8x128xf32> to vector<1x8x128xf32>
    %cst_33 = arith.constant dense<0.000000e+00> : vector<8x128xf32>
    %81 = vector.multi_reduction <add>, %80, %cst_33 [0] : vector<1x8x128xf32> to vector<8x128xf32>
    %82 = arith.addf %7, %81 : vector<8x128xf32>
    %c0_34 = arith.constant 0 : index
    %c3 = arith.constant 3 : index
    %83 = arith.index_cast %9 : i32 to index
    %c0_35 = arith.constant 0 : index
    %84 = vector.load %arg3[%c0_34, %c3, %83, %c0_35] : memref<1x4x8x128xf32, #tpu.memory_space<vmem>>, vector<1x1x8x128xf32>
    %85 = vector.shape_cast %84 : vector<1x1x8x128xf32> to vector<8x128xf32>
    %c3_i32 = arith.constant 3 : i32
    %86 = vector.broadcast %c3_i32 : i32 to vector<8x128xi32>
    %87 = arith.cmpi eq, %19, %86 : vector<8x128xi32>
    %cst_36 = arith.constant 0.000000e+00 : f32
    %88 = vector.broadcast %cst_36 : f32 to vector<8x128xf32>
    %89 = arith.select %14, %85, %88 : vector<8x128xi1>, vector<8x128xf32>
    %cst_37 = arith.constant 0.000000e+00 : f32
    %90 = vector.broadcast %cst_37 : f32 to vector<8x128xf32>
    %91 = arith.select %87, %89, %90 : vector<8x128xi1>, vector<8x128xf32>
    %cst_38 = arith.constant 0.000000e+00 : f32
    %92 = vector.broadcast %cst_38 : f32 to vector<8x128xf32>
    %93 = arith.select %87, %16, %92 : vector<8x128xi1>, vector<8x128xf32>
    %94 = vector.shape_cast %91 : vector<8x128xf32> to vector<1x8x128xf32>
    %cst_39 = arith.constant dense<0.000000e+00> : vector<8x128xf32>
    %95 = vector.multi_reduction <add>, %94, %cst_39 [0] : vector<1x8x128xf32> to vector<8x128xf32>
    %96 = arith.addf %7, %95 : vector<8x128xf32>
    %97 = vector.shape_cast %93 : vector<8x128xf32> to vector<1x8x128xf32>
    %cst_40 = arith.constant dense<0.000000e+00> : vector<8x128xf32>
    %98 = vector.multi_reduction <add>, %97, %cst_40 [0] : vector<1x8x128xf32> to vector<8x128xf32>
    %99 = arith.addf %7, %98 : vector<8x128xf32>
    %100 = arith.mulf %89, %89 : vector<8x128xf32>
    %101 = vector.shape_cast %100 : vector<8x128xf32> to vector<1x8x128xf32>
    %cst_41 = arith.constant dense<0.000000e+00> : vector<8x128xf32>
    %102 = vector.multi_reduction <add>, %101, %cst_41 [0] : vector<1x8x128xf32> to vector<8x128xf32>
    %103 = arith.addf %7, %102 : vector<8x128xf32>
    %c1_i32_42 = arith.constant 1 : i32
    %c0_43 = arith.constant 0 : index
    %c0_44 = arith.constant 0 : index
    %c0_45 = arith.constant 0 : index
    %c0_46 = arith.constant 0 : index
    %c0_47 = arith.constant 0 : index
    %104 = vector.load %arg5[%c0_43, %c0_44, %c0_45, %c0_46, %c0_47] : memref<1x3x4x8x128xf32, #tpu.memory_space<vmem>>, vector<1x1x1x8x128xf32>
    %105 = vector.shape_cast %104 : vector<1x1x1x8x128xf32> to vector<8x128xf32>
    %106 = arith.addf %105, %33 : vector<8x128xf32>
    %c0_48 = arith.constant 0 : index
    %c0_49 = arith.constant 0 : index
    %c0_50 = arith.constant 0 : index
    %c0_51 = arith.constant 0 : index
    %c0_52 = arith.constant 0 : index
    %107 = vector.load %arg5[%c0_48, %c0_49, %c0_50, %c0_51, %c0_52] : memref<1x3x4x8x128xf32, #tpu.memory_space<vmem>>, vector<1x1x1x8x128xf32>
    %108 = vector.shape_cast %107 : vector<1x1x1x8x128xf32> to vector<8x128xf32>
    %109 = vector.shape_cast %106 : vector<8x128xf32> to vector<1x1x1x8x128xf32>
    tpu.vector_store %arg5[%c0_48, %c0_49, %c0_50, %c0_51, %c0_52], %109 {strides = array<i32>} : memref<1x3x4x8x128xf32, #tpu.memory_space<vmem>>, vector<1x1x1x8x128xf32>,
    %c0_53 = arith.constant 0 : index
    %c1_54 = arith.constant 1 : index
    %c0_55 = arith.constant 0 : index
    %c0_56 = arith.constant 0 : index
    %c0_57 = arith.constant 0 : index
    %110 = vector.load %arg5[%c0_53, %c1_54, %c0_55, %c0_56, %c0_57] : memref<1x3x4x8x128xf32, #tpu.memory_space<vmem>>, vector<1x1x1x8x128xf32>
    %111 = vector.shape_cast %110 : vector<1x1x1x8x128xf32> to vector<8x128xf32>
    %112 = arith.addf %111, %36 : vector<8x128xf32>
    %c0_58 = arith.constant 0 : index
    %c1_59 = arith.constant 1 : index
    %c0_60 = arith.constant 0 : index
    %c0_61 = arith.constant 0 : index
    %c0_62 = arith.constant 0 : index
    %113 = vector.load %arg5[%c0_58, %c1_59, %c0_60, %c0_61, %c0_62] : memref<1x3x4x8x128xf32, #tpu.memory_space<vmem>>, vector<1x1x1x8x128xf32>
    %114 = vector.shape_cast %113 : vector<1x1x1x8x128xf32> to vector<8x128xf32>
    %115 = vector.shape_cast %112 : vector<8x128xf32> to vector<1x1x1x8x128xf32>
    tpu.vector_store %arg5[%c0_58, %c1_59, %c0_60, %c0_61, %c0_62], %115 {strides = array<i32>} : memref<1x3x4x8x128xf32, #tpu.memory_space<vmem>>, vector<1x1x1x8x128xf32>,
    %c0_63 = arith.constant 0 : index
    %c2_64 = arith.constant 2 : index
    %c0_65 = arith.constant 0 : index
    %c0_66 = arith.constant 0 : index
    %c0_67 = arith.constant 0 : index
    %116 = vector.load %arg5[%c0_63, %c2_64, %c0_65, %c0_66, %c0_67] : memref<1x3x4x8x128xf32, #tpu.memory_space<vmem>>, vector<1x1x1x8x128xf32>
    %117 = vector.shape_cast %116 : vector<1x1x1x8x128xf32> to vector<8x128xf32>
    %118 = arith.addf %117, %40 : vector<8x128xf32>
    %c0_68 = arith.constant 0 : index
    %c2_69 = arith.constant 2 : index
    %c0_70 = arith.constant 0 : index
    %c0_71 = arith.constant 0 : index
    %c0_72 = arith.constant 0 : index
    %119 = vector.load %arg5[%c0_68, %c2_69, %c0_70, %c0_71, %c0_72] : memref<1x3x4x8x128xf32, #tpu.memory_space<vmem>>, vector<1x1x1x8x128xf32>
    %120 = vector.shape_cast %119 : vector<1x1x1x8x128xf32> to vector<8x128xf32>
    %121 = vector.shape_cast %118 : vector<8x128xf32> to vector<1x1x1x8x128xf32>
    tpu.vector_store %arg5[%c0_68, %c2_69, %c0_70, %c0_71, %c0_72], %121 {strides = array<i32>} : memref<1x3x4x8x128xf32, #tpu.memory_space<vmem>>, vector<1x1x1x8x128xf32>,
    %c0_73 = arith.constant 0 : index
    %c0_74 = arith.constant 0 : index
    %c1_75 = arith.constant 1 : index
    %c0_76 = arith.constant 0 : index
    %c0_77 = arith.constant 0 : index
    %122 = vector.load %arg5[%c0_73, %c0_74, %c1_75, %c0_76, %c0_77] : memref<1x3x4x8x128xf32, #tpu.memory_space<vmem>>, vector<1x1x1x8x128xf32>
    %123 = vector.shape_cast %122 : vector<1x1x1x8x128xf32> to vector<8x128xf32>
    %124 = arith.addf %123, %54 : vector<8x128xf32>
    %c0_78 = arith.constant 0 : index
    %c0_79 = arith.constant 0 : index
    %c1_80 = arith.constant 1 : index
    %c0_81 = arith.constant 0 : index
    %c0_82 = arith.constant 0 : index
    %125 = vector.load %arg5[%c0_78, %c0_79, %c1_80, %c0_81, %c0_82] : memref<1x3x4x8x128xf32, #tpu.memory_space<vmem>>, vector<1x1x1x8x128xf32>
    %126 = vector.shape_cast %125 : vector<1x1x1x8x128xf32> to vector<8x128xf32>
    %127 = vector.shape_cast %124 : vector<8x128xf32> to vector<1x1x1x8x128xf32>
    tpu.vector_store %arg5[%c0_78, %c0_79, %c1_80, %c0_81, %c0_82], %127 {strides = array<i32>} : memref<1x3x4x8x128xf32, #tpu.memory_space<vmem>>, vector<1x1x1x8x128xf32>,
    %c0_83 = arith.constant 0 : index
    %c1_84 = arith.constant 1 : index
    %c1_85 = arith.constant 1 : index
    %c0_86 = arith.constant 0 : index
    %c0_87 = arith.constant 0 : index
    %128 = vector.load %arg5[%c0_83, %c1_84, %c1_85, %c0_86, %c0_87] : memref<1x3x4x8x128xf32, #tpu.memory_space<vmem>>, vector<1x1x1x8x128xf32>
    %129 = vector.shape_cast %128 : vector<1x1x1x8x128xf32> to vector<8x128xf32>
    %130 = arith.addf %129, %57 : vector<8x128xf32>
    %c0_88 = arith.constant 0 : index
    %c1_89 = arith.constant 1 : index
    %c1_90 = arith.constant 1 : index
    %c0_91 = arith.constant 0 : index
    %c0_92 = arith.constant 0 : index
    %131 = vector.load %arg5[%c0_88, %c1_89, %c1_90, %c0_91, %c0_92] : memref<1x3x4x8x128xf32, #tpu.memory_space<vmem>>, vector<1x1x1x8x128xf32>
    %132 = vector.shape_cast %131 : vector<1x1x1x8x128xf32> to vector<8x128xf32>
    %133 = vector.shape_cast %130 : vector<8x128xf32> to vector<1x1x1x8x128xf32>
    tpu.vector_store %arg5[%c0_88, %c1_89, %c1_90, %c0_91, %c0_92], %133 {strides = array<i32>} : memref<1x3x4x8x128xf32, #tpu.memory_space<vmem>>, vector<1x1x1x8x128xf32>,
    %c0_93 = arith.constant 0 : index
    %c2_94 = arith.constant 2 : index
    %c1_95 = arith.constant 1 : index
    %c0_96 = arith.constant 0 : index
    %c0_97 = arith.constant 0 : index
    %134 = vector.load %arg5[%c0_93, %c2_94, %c1_95, %c0_96, %c0_97] : memref<1x3x4x8x128xf32, #tpu.memory_space<vmem>>, vector<1x1x1x8x128xf32>
    %135 = vector.shape_cast %134 : vector<1x1x1x8x128xf32> to vector<8x128xf32>
    %136 = arith.addf %135, %61 : vector<8x128xf32>
    %c0_98 = arith.constant 0 : index
    %c2_99 = arith.constant 2 : index
    %c1_100 = arith.constant 1 : index
    %c0_101 = arith.constant 0 : index
    %c0_102 = arith.constant 0 : index
    %137 = vector.load %arg5[%c0_98, %c2_99, %c1_100, %c0_101, %c0_102] : memref<1x3x4x8x128xf32, #tpu.memory_space<vmem>>, vector<1x1x1x8x128xf32>
    %138 = vector.shape_cast %137 : vector<1x1x1x8x128xf32> to vector<8x128xf32>
    %139 = vector.shape_cast %136 : vector<8x128xf32> to vector<1x1x1x8x128xf32>
    tpu.vector_store %arg5[%c0_98, %c2_99, %c1_100, %c0_101, %c0_102], %139 {strides = array<i32>} : memref<1x3x4x8x128xf32, #tpu.memory_space<vmem>>, vector<1x1x1x8x128xf32>,
    %c0_103 = arith.constant 0 : index
    %c0_104 = arith.constant 0 : index
    %c2_105 = arith.constant 2 : index
    %c0_106 = arith.constant 0 : index
    %c0_107 = arith.constant 0 : index
    %140 = vector.load %arg5[%c0_103, %c0_104, %c2_105, %c0_106, %c0_107] : memref<1x3x4x8x128xf32, #tpu.memory_space<vmem>>, vector<1x1x1x8x128xf32>
    %141 = vector.shape_cast %140 : vector<1x1x1x8x128xf32> to vector<8x128xf32>
    %142 = arith.addf %141, %75 : vector<8x128xf32>
    %c0_108 = arith.constant 0 : index
    %c0_109 = arith.constant 0 : index
    %c2_110 = arith.constant 2 : index
    %c0_111 = arith.constant 0 : index
    %c0_112 = arith.constant 0 : index
    %143 = vector.load %arg5[%c0_108, %c0_109, %c2_110, %c0_111, %c0_112] : memref<1x3x4x8x128xf32, #tpu.memory_space<vmem>>, vector<1x1x1x8x128xf32>
    %144 = vector.shape_cast %143 : vector<1x1x1x8x128xf32> to vector<8x128xf32>
    %145 = vector.shape_cast %142 : vector<8x128xf32> to vector<1x1x1x8x128xf32>
    tpu.vector_store %arg5[%c0_108, %c0_109, %c2_110, %c0_111, %c0_112], %145 {strides = array<i32>} : memref<1x3x4x8x128xf32, #tpu.memory_space<vmem>>, vector<1x1x1x8x128xf32>,
    %c0_113 = arith.constant 0 : index
    %c1_114 = arith.constant 1 : index
    %c2_115 = arith.constant 2 : index
    %c0_116 = arith.constant 0 : index
    %c0_117 = arith.constant 0 : index
    %146 = vector.load %arg5[%c0_113, %c1_114, %c2_115, %c0_116, %c0_117] : memref<1x3x4x8x128xf32, #tpu.memory_space<vmem>>, vector<1x1x1x8x128xf32>
    %147 = vector.shape_cast %146 : vector<1x1x1x8x128xf32> to vector<8x128xf32>
    %148 = arith.addf %147, %78 : vector<8x128xf32>
    %c0_118 = arith.constant 0 : index
    %c1_119 = arith.constant 1 : index
    %c2_120 = arith.constant 2 : index
    %c0_121 = arith.constant 0 : index
    %c0_122 = arith.constant 0 : index
    %149 = vector.load %arg5[%c0_118, %c1_119, %c2_120, %c0_121, %c0_122] : memref<1x3x4x8x128xf32, #tpu.memory_space<vmem>>, vector<1x1x1x8x128xf32>
    %150 = vector.shape_cast %149 : vector<1x1x1x8x128xf32> to vector<8x128xf32>
    %151 = vector.shape_cast %148 : vector<8x128xf32> to vector<1x1x1x8x128xf32>
    tpu.vector_store %arg5[%c0_118, %c1_119, %c2_120, %c0_121, %c0_122], %151 {strides = array<i32>} : memref<1x3x4x8x128xf32, #tpu.memory_space<vmem>>, vector<1x1x1x8x128xf32>,
    %c0_123 = arith.constant 0 : index
    %c2_124 = arith.constant 2 : index
    %c2_125 = arith.constant 2 : index
    %c0_126 = arith.constant 0 : index
    %c0_127 = arith.constant 0 : index
    %152 = vector.load %arg5[%c0_123, %c2_124, %c2_125, %c0_126, %c0_127] : memref<1x3x4x8x128xf32, #tpu.memory_space<vmem>>, vector<1x1x1x8x128xf32>
    %153 = vector.shape_cast %152 : vector<1x1x1x8x128xf32> to vector<8x128xf32>
    %154 = arith.addf %153, %82 : vector<8x128xf32>
    %c0_128 = arith.constant 0 : index
    %c2_129 = arith.constant 2 : index
    %c2_130 = arith.constant 2 : index
    %c0_131 = arith.constant 0 : index
    %c0_132 = arith.constant 0 : index
    %155 = vector.load %arg5[%c0_128, %c2_129, %c2_130, %c0_131, %c0_132] : memref<1x3x4x8x128xf32, #tpu.memory_space<vmem>>, vector<1x1x1x8x128xf32>
    %156 = vector.shape_cast %155 : vector<1x1x1x8x128xf32> to vector<8x128xf32>
    %157 = vector.shape_cast %154 : vector<8x128xf32> to vector<1x1x1x8x128xf32>
    tpu.vector_store %arg5[%c0_128, %c2_129, %c2_130, %c0_131, %c0_132], %157 {strides = array<i32>} : memref<1x3x4x8x128xf32, #tpu.memory_space<vmem>>, vector<1x1x1x8x128xf32>,
    %c0_133 = arith.constant 0 : index
    %c0_134 = arith.constant 0 : index
    %c3_135 = arith.constant 3 : index
    %c0_136 = arith.constant 0 : index
    %c0_137 = arith.constant 0 : index
    %158 = vector.load %arg5[%c0_133, %c0_134, %c3_135, %c0_136, %c0_137] : memref<1x3x4x8x128xf32, #tpu.memory_space<vmem>>, vector<1x1x1x8x128xf32>
    %159 = vector.shape_cast %158 : vector<1x1x1x8x128xf32> to vector<8x128xf32>
    %160 = arith.addf %159, %96 : vector<8x128xf32>
    %c0_138 = arith.constant 0 : index
    %c0_139 = arith.constant 0 : index
    %c3_140 = arith.constant 3 : index
    %c0_141 = arith.constant 0 : index
    %c0_142 = arith.constant 0 : index
    %161 = vector.load %arg5[%c0_138, %c0_139, %c3_140, %c0_141, %c0_142] : memref<1x3x4x8x128xf32, #tpu.memory_space<vmem>>, vector<1x1x1x8x128xf32>
    %162 = vector.shape_cast %161 : vector<1x1x1x8x128xf32> to vector<8x128xf32>
    %163 = vector.shape_cast %160 : vector<8x128xf32> to vector<1x1x1x8x128xf32>
    tpu.vector_store %arg5[%c0_138, %c0_139, %c3_140, %c0_141, %c0_142], %163 {strides = array<i32>} : memref<1x3x4x8x128xf32, #tpu.memory_space<vmem>>, vector<1x1x1x8x128xf32>,
    %c0_143 = arith.constant 0 : index
    %c1_144 = arith.constant 1 : index
    %c3_145 = arith.constant 3 : index
    %c0_146 = arith.constant 0 : index
    %c0_147 = arith.constant 0 : index
    %164 = vector.load %arg5[%c0_143, %c1_144, %c3_145, %c0_146, %c0_147] : memref<1x3x4x8x128xf32, #tpu.memory_space<vmem>>, vector<1x1x1x8x128xf32>
    %165 = vector.shape_cast %164 : vector<1x1x1x8x128xf32> to vector<8x128xf32>
    %166 = arith.addf %165, %99 : vector<8x128xf32>
    %c0_148 = arith.constant 0 : index
    %c1_149 = arith.constant 1 : index
    %c3_150 = arith.constant 3 : index
    %c0_151 = arith.constant 0 : index
    %c0_152 = arith.constant 0 : index
    %167 = vector.load %arg5[%c0_148, %c1_149, %c3_150, %c0_151, %c0_152] : memref<1x3x4x8x128xf32, #tpu.memory_space<vmem>>, vector<1x1x1x8x128xf32>
    %168 = vector.shape_cast %167 : vector<1x1x1x8x128xf32> to vector<8x128xf32>
    %169 = vector.shape_cast %166 : vector<8x128xf32> to vector<1x1x1x8x128xf32>
    tpu.vector_store %arg5[%c0_148, %c1_149, %c3_150, %c0_151, %c0_152], %169 {strides = array<i32>} : memref<1x3x4x8x128xf32, #tpu.memory_space<vmem>>, vector<1x1x1x8x128xf32>,
    %c0_153 = arith.constant 0 : index
    %c2_154 = arith.constant 2 : index
    %c3_155 = arith.constant 3 : index
    %c0_156 = arith.constant 0 : index
    %c0_157 = arith.constant 0 : index
    %170 = vector.load %arg5[%c0_153, %c2_154, %c3_155, %c0_156, %c0_157] : memref<1x3x4x8x128xf32, #tpu.memory_space<vmem>>, vector<1x1x1x8x128xf32>
    %171 = vector.shape_cast %170 : vector<1x1x1x8x128xf32> to vector<8x128xf32>
    %172 = arith.addf %171, %103 : vector<8x128xf32>
    %c0_158 = arith.constant 0 : index
    %c2_159 = arith.constant 2 : index
    %c3_160 = arith.constant 3 : index
    %c0_161 = arith.constant 0 : index
    %c0_162 = arith.constant 0 : index
    %173 = vector.load %arg5[%c0_158, %c2_159, %c3_160, %c0_161, %c0_162] : memref<1x3x4x8x128xf32, #tpu.memory_space<vmem>>, vector<1x1x1x8x128xf32>
    %174 = vector.shape_cast %173 : vector<1x1x1x8x128xf32> to vector<8x128xf32>
    %175 = vector.shape_cast %172 : vector<8x128xf32> to vector<1x1x1x8x128xf32>
    tpu.vector_store %arg5[%c0_158, %c2_159, %c3_160, %c0_161, %c0_162], %175 {strides = array<i32>} : memref<1x3x4x8x128xf32, #tpu.memory_space<vmem>>, vector<1x1x1x8x128xf32>,
    return
  }
  func.func @transform_0(%arg0: i32, %arg1: i32, %arg2: i32) -> (i32, i32, i32, i32) {
    %c1_i32 = arith.constant 1 : i32
    %0 = arith.muli %arg0, %c1_i32 : i32
    %1 = arith.addi %0, %arg2 : i32
    %c0_i32 = arith.constant 0 : i32
    %2 = arith.minsi %1, %c0_i32 : i32
    %c0_i32_0 = arith.constant 0 : i32
    %c0_i32_1 = arith.constant 0 : i32
    %c0_i32_2 = arith.constant 0 : i32
    return %arg1, %c0_i32_0, %2, %c0_i32_1 : i32, i32, i32, i32
  }
  func.func @transform_1(%arg0: i32, %arg1: i32, %arg2: i32) -> (i32, i32, i32, i32) {
    %c1_i32 = arith.constant 1 : i32
    %0 = arith.muli %arg0, %c1_i32 : i32
    %1 = arith.addi %0, %arg2 : i32
    %c0_i32 = arith.constant 0 : i32
    %2 = arith.minsi %1, %c0_i32 : i32
    %c0_i32_0 = arith.constant 0 : i32
    %c0_i32_1 = arith.constant 0 : i32
    %c0_i32_2 = arith.constant 0 : i32
    return %arg1, %c0_i32_0, %2, %c0_i32_1 : i32, i32, i32, i32
  }
  func.func @transform_2(%arg0: i32, %arg1: i32, %arg2: i32) -> (i32, i32, i32, i32, i32) {
    %c2_i32 = arith.constant 2 : i32
    %0 = arith.muli %arg0, %c2_i32 : i32
    %1 = arith.addi %0, %arg1 : i32
    %c0_i32 = arith.constant 0 : i32
    %c0_i32_0 = arith.constant 0 : i32
    %c0_i32_1 = arith.constant 0 : i32
    %c0_i32_2 = arith.constant 0 : i32
    %c0_i32_3 = arith.constant 0 : i32
    return %1, %c0_i32, %c0_i32_0, %c0_i32_1, %c0_i32_2 : i32, i32, i32, i32, i32
  }
}

</mosaic_0001>

<bundles_post_ra>
// kernel: dice_loss.1
= control target key start
LH: loop header
LB: loop body
LE: loop exit
PB: predicated region body
PF: predicated region fallthrough
CT: control target
= control target key end

     0   :  { %s582_s9 = smov 0   ;;  %s584_s10 = smov 0   ;;  %s623_s0 = inlined_call_operand.vmem [shape: f32[2,4,8,128], index: 0, kind: input, shape index: {}]   ;;  %s624_s1 = inlined_call_operand.vmem [shape: s32[2,1,8,128], index: 1, kind: input, shape index: {}]   ;;  %s625_s2 = inlined_call_operand.vmem [shape: f32[2,3,4,8,128], index: 2, kind: output, shape index: {}]  }
   0x1   :  { %s586_s11 = smov 0  }
   0x2 LB: > { %s27_s12 = sadd.s32 1, %s560_s10  ;;  %p482_p0 = scmp.ge.s32.totalorder %s564_s11, 1  ;;  %s564_s11 = sphi %s586_s11, %s12_s11   ;;  %s560_s10 = sphi %s584_s10, %s627_s10   ;;  %s556_s9 = sphi %s582_s9, %s626_s9  }
   0x3   : > { %p29_p1 = scmp.ge.s32.totalorder %s27_s12, 2  ;;  %p178_p2 = scmp.lt.s32.totalorder %s564_s11, 3 }
   0x5   : > { %s629_s12 = smov (%p29_p1, %s27_s12), 0  ;;  %p179_p3 = pnand %p482_p0, %p178_p2 }
   0x6   : > { %p221_p4 = scmp.lt.s32.totalorder (!%p179_p3), %s556_s9, 1 }
   0x7   : > { %182 = sbr.rel (%p179_p3) target bundleno = 26 (0x1a), region = 28 }
   0xc   : > { %v272_v0 = vlaneseq  ;;  %s631_s9 = smov (!%p221_p4, %s556_s9), 1  ;;  %v566_v3 = vmov 0.0  }
   0xd   : > { %s516_s13 = smul.u32 96, %s631_s9  ;;  %s515_s14 = sshll.u32 %s631_s9, 5 }
   0xe   : > { %v273_v1 = vshrl.u32 %v272_v0, 7  ;;  %s228_s17 = scalar_lea.vmem %s623_s0, %s515_s14  ;;  %s485_s18 = sshll.u32 %s631_s9, 3 }
   0xf   : > { %s241_s21 = scalar_lea.vmem %s624_s1, %s485_s18  ;;  %v280_v2 = vld [vmem:[%s228_s17] sm:$0xff]  ;;  %v488_v5 = vld [vmem:[%s228_s17 + $0x8] sm:$0xff]  ;;  %v489_v6 = vld [vmem:[%s228_s17 + $0x10] sm:$0xff]  ;;  %s251_s24 = scalar_lea.vmem %s625_s2, %s516_s13 }
  0x10   : > { %vm276_vm0 = vcmp.lt.s32.totalorder %v273_v1, 2  ;;  %v279_v7 = vld [vmem:[%s241_s21] sm:$0xff]  ;;  %v490_v17 = vld [vmem:[%s228_s17 + $0x18] sm:$0xff] }
  0x11   : > { %v487_v4 = vsel %vm276_vm0, 1.0, %v566_v3  ;;  %v282_v8 = vsel %vm276_vm0, %v280_v2, 0.0  ;;  %v296_v9 = vsel %vm276_vm0, %v488_v5, 0.0  ;;  %v310_v10 = vsel %vm276_vm0, %v489_v6, 0.0 }
  0x12   : > { %vm281_vm1 = vcmp.eq.s32.totalorder %v279_v7, 0  ;;  %v289_v11 = vmul.f32 %v282_v8, %v282_v8  ;;  %vm295_vm2 = vcmp.eq.s32.totalorder %v279_v7, 1  ;;  %v303_v12 = vmul.f32 %v296_v9, %v296_v9 }
  0x13   : > { %v283_v13 = vsel %vm281_vm1, %v282_v8, 0.0  ;;  %v284_v14 = vsel %vm281_vm1, %v487_v4, 0.0  ;;  %v297_v15 = vsel %vm295_vm2, %v296_v9, 0.0  ;;  %v298_v16 = vsel %vm295_vm2, %v487_v4, 0.0 }
  0x14   : > { %vm309_vm3 = vcmp.eq.s32.totalorder %v279_v7, 2  ;;  %v317_v18 = vmul.f32 %v310_v10, %v310_v10  ;;  %336 = vst [vmem:[%s251_s24] sm:$0xff] %v283_v13  ;;  %492 = vst [vmem:[%s251_s24 + $0x20] sm:$0xff] %v284_v14  ;;  %vm323_vm4 = vcmp.eq.s32.totalorder %v279_v7, 3  ;;  %v324_v21 = vsel %vm276_vm0, %v490_v17, 0.0 }
  0x15   : > { %494 = vst [vmem:[%s251_s24 + $0x40] sm:$0xff] %v289_v11  ;;  %496 = vst [vmem:[%s251_s24 + $0x8] sm:$0xff] %v297_v15  ;;  %v311_v19 = vsel %vm309_vm3, %v310_v10, 0.0  ;;  %v312_v20 = vsel %vm309_vm3, %v487_v4, 0.0  ;;  %v325_v22 = vsel %vm323_vm4, %v324_v21, 0.0  ;;  %v326_v23 = vsel %vm323_vm4, %v487_v4, 0.0 }
  0x16   : > { %498 = vst [vmem:[%s251_s24 + $0x28] sm:$0xff] %v298_v16  ;;  %500 = vst [vmem:[%s251_s24 + $0x48] sm:$0xff] %v303_v12  ;;  %v331_v24 = vmul.f32 %v324_v21, %v324_v21 }
  0x17   : > { %502 = vst [vmem:[%s251_s24 + $0x10] sm:$0xff] %v311_v19  ;;  %504 = vst [vmem:[%s251_s24 + $0x30] sm:$0xff] %v312_v20 }
  0x18   : > { %506 = vst [vmem:[%s251_s24 + $0x50] sm:$0xff] %v317_v18  ;;  %508 = vst [vmem:[%s251_s24 + $0x18] sm:$0xff] %v325_v22 }
  0x19   : > { %510 = vst [vmem:[%s251_s24 + $0x38] sm:$0xff] %v326_v23  ;;  %512 = vst [vmem:[%s251_s24 + $0x58] sm:$0xff] %v331_v24 }
  0x1a PF: > { %s12_s11 = sadd.s32 1, %s564_s11   ;;  %s626_s9 = smov %s560_s10 }
  0x1b   : > { %p9_p5 = scmp.ge.s32.totalorder %s12_s11, 4   ;;  %s627_s10 = smov %s629_s12 }
  0x1d   :  { %11 = sbr.rel (!%p9_p5) target bundleno = 2 (0x2), region = 79 }

</bundles_post_ra>
